<compile_context>
chip_gen: v7x
topology: tpu7x:2x2x1
jax: 0.10.0
libtpu: 0.0.40
codegen_flags: <defaults>
</compile_context>

<pallas_src>
import functools

import jax
import jax.numpy as jnp
from jax import lax
from jax.experimental import pallas as pl
from jax.experimental.pallas import tpu as pltpu

_NEG_BIG = -1e30  # finite "minus infinity" for sanitizing ragged-edge logits (f32)


def _round_up(x: int, m: int) -> int:
    return ((x + m - 1) // m) * m


# ----------------------------- kernels --------------------------------------


def _bce_kernel(beta_ref, pred_ref, true_ref, mean_ref, logvar_ref, out_ref, acc_ref,
                *, B, D, b_tile, d_tile, inv_bd, neg_half_inv_b, mask_rows, mask_cols):
    """Grid = (batch_tiles [parallel], feature_tiles [arbitrary/reduction])."""
    bi = pl.program_id(0)
    di = pl.program_id(1)
    nd = pl.num_programs(1)

    @pl.when(di == 0)
    def _init():
        acc_ref[...] = jnp.zeros_like(acc_ref)

    x = pred_ref[...].astype(jnp.float32)
    z = true_ref[...].astype(jnp.float32)
    # numerically-stable BCE-with-logits (== torch.nn.BCEWithLogitsLoss, mean reduction)
    bce = jnp.maximum(x, 0.0) - x * z + jnp.log1p(jnp.exp(-jnp.abs(x)))
    if mask_rows or mask_cols:
        row = lax.broadcasted_iota(jnp.int32, (b_tile, d_tile), 0) + bi * b_tile
        col = lax.broadcasted_iota(jnp.int32, (b_tile, d_tile), 1) + di * d_tile
        bce = jnp.where((row < B) & (col < D), bce, 0.0)

    # Sublane/lane-preserving partial: only vreg-wise VPU adds per grid step.
    acc_ref[...] += bce.reshape(b_tile // 8, 8, d_tile).sum(axis=0)

    @pl.when(di == nd - 1)
    def _epilogue():
        # Single cross-lane reduce per batch tile (hidden under the DMA stream).
        recon = jnp.sum(acc_ref[...]) * inv_bd
        mu = mean_ref[...].astype(jnp.float32)
        lv = logvar_ref[...].astype(jnp.float32)
        kl_e = 1.0 + lv - mu * mu - jnp.exp(lv)
        if mask_rows:
            r = lax.broadcasted_iota(jnp.int32, kl_e.shape, 0) + bi * b_tile
            kl_e = jnp.where(r < B, kl_e, 0.0)
        part = recon + beta_ref[0] * (neg_half_inv_b * jnp.sum(kl_e))
        r8 = lax.broadcasted_iota(jnp.int32, (1, 8, 128), 1)
        c8 = lax.broadcasted_iota(jnp.int32, (1, 8, 128), 2)
        out_ref[...] = jnp.where((r8 == 0) & (c8 == 0), part, 0.0)


def _multi_kernel(beta_ref, pred_ref, true_ref, mean_ref, logvar_ref, out_ref,
                  m_ref, s_ref, dot_ref, tsum_ref,
                  *, B, D, b_tile, d_tile, inv_b, neg_half_inv_b, mask_rows, mask_cols):
    """Online (flash-style) logsumexp cross-entropy over an inner feature grid axis.

    recon_row = -sum_D((x - lse) * t) = lse * sum_D(t) - sum_D(x * t)
    Running row-max m, row-sum s, sum(x*t) and sum(t) live in VMEM scratch.
    """
    bi = pl.program_id(0)
    di = pl.program_id(1)
    nd = pl.num_programs(1)

    @pl.when(di == 0)
    def _init():
        m_ref[...] = jnp.full_like(m_ref, _NEG_BIG)
        s_ref[...] = jnp.zeros_like(s_ref)
        dot_ref[...] = jnp.zeros_like(dot_ref)
        tsum_ref[...] = jnp.zeros_like(tsum_ref)

    x = pred_ref[...].astype(jnp.float32)
    t = true_ref[...].astype(jnp.float32)
    if mask_rows or mask_cols:
        row = lax.broadcasted_iota(jnp.int32, (b_tile, d_tile), 0) + bi * b_tile
        col = lax.broadcasted_iota(jnp.int32, (b_tile, d_tile), 1) + di * d_tile
        valid = (row < B) & (col < D)
        x = jnp.where(valid, x, _NEG_BIG)
        t = jnp.where(valid, t, 0.0)

    m_prev = m_ref[...]
    m_new = jnp.maximum(m_prev, jnp.max(x, axis=-1, keepdims=True))
    s_ref[...] = (s_ref[...] * jnp.exp(m_prev - m_new)
                  + jnp.sum(jnp.exp(x - m_new), axis=-1, keepdims=True))
    m_ref[...] = m_new
    dot_ref[...] += jnp.sum(x * t, axis=-1, keepdims=True)
    tsum_ref[...] += jnp.sum(t, axis=-1, keepdims=True)

    @pl.when(di == nd - 1)
    def _epilogue():
        lse = m_ref[...] + jnp.log(s_ref[...])
        row_loss = lse * tsum_ref[...] - dot_ref[...]
        mu = mean_ref[...].astype(jnp.float32)
        lv = logvar_ref[...].astype(jnp.float32)
        kl_e = 1.0 + lv - mu * mu - jnp.exp(lv)
        if mask_rows:
            r1 = lax.broadcasted_iota(jnp.int32, row_loss.shape, 0) + bi * b_tile
            row_loss = jnp.where(r1 < B, row_loss, 0.0)
            r2 = lax.broadcasted_iota(jnp.int32, kl_e.shape, 0) + bi * b_tile
            kl_e = jnp.where(r2 < B, kl_e, 0.0)
        part = inv_b * jnp.sum(row_loss) + beta_ref[0] * (neg_half_inv_b * jnp.sum(kl_e))
        r8 = lax.broadcasted_iota(jnp.int32, (1, 8, 128), 1)
        c8 = lax.broadcasted_iota(jnp.int32, (1, 8, 128), 2)
        out_ref[...] = jnp.where((r8 == 0) & (c8 == 0), part, 0.0)


# ----------------------------- wrapper ---------------------------------------


def _vmem_limits():
    """Generation-aware VMEM limit and input-tile budget (bytes)."""
    try:
        cap = int(pltpu.get_tpu_info().vmem_capacity_bytes)
    except Exception:
        cap = 128 * 1024 * 1024
    limit = min((cap * 3) // 4, 64 * 1024 * 1024)      # 48 MiB on v7x, 64 MiB on v5e/v6e
    budget = min(32 * 1024 * 1024, limit // 2)          # double-buffered input blocks
    return limit, budget


def _sublane_multiple(*dtypes):
    m = 8
    for dt in dtypes:
        isz = jnp.dtype(dt).itemsize
        m = max(m, 8 * max(1, 4 // isz))                # 8 f32, 16 bf16, 32 int8/fp8
    return m


@functools.partial(jax.jit, static_argnames=("multi",))
def vae_loss(pred, true, mean, logvar, beta=1.0, *, multi=False):
    """Pallas implementation of VAELoss.forward.

    beta: KL weight (1.0 reproduces the non-anneal / eval branch; the anneal-train
    branch is obtained by passing the host-side annealed beta).
    Prefer bf16 pred/true at the call site: the kernel is HBM-bandwidth bound and
    upcasts per tile; mean/logvar are tiny and may stay f32.
    """
    B, D = pred.shape
    _, L = mean.shape

    limit, budget = _vmem_limits()
    sub = _sublane_multiple(pred.dtype, true.dtype, mean.dtype, logvar.dtype)

    d_tile = min(_round_up(D, 128), 2048)
    it = lambda a: jnp.dtype(a.dtype).itemsize
    bytes_per_row = 2 * (d_tile * (it(pred) + it(true)) + L * (it(mean) + it(logvar)))
    b_tile = budget // max(bytes_per_row, 1)
    b_tile = max(sub, (b_tile // sub) * sub)
    b_tile = min(b_tile, 4096, _round_up(B, sub))

    nb = pl.cdiv(B, b_tile)
    nd = pl.cdiv(D, d_tile)
    mask_rows = (B % b_tile) != 0
    mask_cols = (D % d_tile) != 0

    beta_arr = jnp.asarray(beta, jnp.float32).reshape((1,))

    common = dict(B=B, D=D, b_tile=b_tile, d_tile=d_tile,
                  neg_half_inv_b=-0.5 / B, mask_rows=mask_rows, mask_cols=mask_cols)
    if multi:
        kernel = functools.partial(_multi_kernel, inv_b=1.0 / B, **common)
        scratch = [pltpu.VMEM((b_tile, 1), jnp.float32) for _ in range(4)]
    else:
        kernel = functools.partial(_bce_kernel, inv_bd=1.0 / (B * D), **common)
        scratch = [pltpu.VMEM((8, d_tile), jnp.float32)]

    # TODO(synk): if profiling shows exposed DMA, add pipeline_mode=pl.Buffered(3)
    # on the pred/true BlockSpecs.
    pt_spec = pl.BlockSpec((b_tile, d_tile), lambda bi, di: (bi, di))
    ml_spec = pl.BlockSpec((b_tile, L), lambda bi, di: (bi, 0))
    out_spec = pl.BlockSpec((1, 8, 128), lambda bi, di: (bi, 0, 0))

    cost = pl.CostEstimate(
        flops=6 * B * D + 5 * B * L,
        transcendentals=2 * B * D + B * L,
        bytes_accessed=pred.size * it(pred) + true.size * it(true)
        + mean.size * it(mean) + logvar.size * it(logvar) + nb * 8 * 128 * 4 + 4,
    )

    partials = pl.pallas_call(
        kernel,
        out_shape=jax.ShapeDtypeStruct((nb, 8, 128), jnp.float32),
        grid=(nb, nd),
        in_specs=[
            pl.BlockSpec(memory_space=pltpu.SMEM),  # beta (runtime scalar)
            pt_spec,                                # pred
            pt_spec,                                # true
            ml_spec,                                # mean
            ml_spec,                                # logvar
        ],
        out_specs=out_spec,
        scratch_shapes=scratch,
        compiler_params=pltpu.CompilerParams(
            dimension_semantics=("parallel", "arbitrary"),
            vmem_limit_bytes=limit,
        ),
        cost_estimate=cost,
    )(beta_arr, pred, true, mean, logvar)

    # Tiny per-batch-tile partial sum (only one nonzero element per tile).
    return jnp.sum(partials)


# TODO(synk): the stateful KL-anneal schedule (set_beta / update_count) is host-side
# Python state in the PyTorch module; here beta is simply passed in as an argument.


def _reference(pred, true, mean, logvar, beta=1.0, multi=False):
    """Pure-JAX reference mirroring the PyTorch forward."""
    if multi:
        log_sm = jax.nn.log_softmax(pred.astype(jnp.float32), axis=-1)
        recon = -jnp.mean(jnp.sum(log_sm * true.astype(jnp.float32), axis=-1))
    else:
        x = pred.astype(jnp.float32)
        z = true.astype(jnp.float32)
        bce = jnp.maximum(x, 0.0) - x * z + jnp.log1p(jnp.exp(-jnp.abs(x)))
        recon = jnp.mean(bce)
    mu = mean.astype(jnp.float32)
    lv = logvar.astype(jnp.float32)
    kl = -0.5 * jnp.mean(jnp.sum(1.0 + lv - mu * mu - jnp.exp(lv), axis=1))
    return recon + beta * kl


if __name__ == "__main__":
    key = jax.random.PRNGKey(0)
    k1, k2, k3, k4, k5 = jax.random.split(key, 5)

    def check(name, out, ref, tol):
        out = jax.block_until_ready(out)
        assert jnp.allclose(out, ref, atol=tol, rtol=tol), (name, out, ref)

    # --- aligned small shapes ---
    B, D, L = 8, 128, 32
    pred = jax.random.normal(k1, (B, D), jnp.float32)
    true_bce = (jax.random.uniform(k2, (B, D)) > 0.5).astype(jnp.float32)
    true_multi = jax.nn.softmax(jax.random.normal(k5, (B, D), jnp.float32), axis=-1)
    mean = jax.random.normal(k3, (B, L), jnp.float32)
    logvar = 0.1 * jax.random.normal(k4, (B, L), jnp.float32)

    check("bce_aligned", vae_loss(pred, true_bce, mean, logvar, beta=1.0, multi=False),
          _reference(pred, true_bce, mean, logvar, 1.0, False), 1e-5)
    check("multi_aligned", vae_loss(pred, true_multi, mean, logvar, beta=0.25, multi=True),
          _reference(pred, true_multi, mean, logvar, 0.25, True), 1e-5)

    # --- ragged shapes: exercises in-kernel edge masking (no wrapper-side padding) ---
    B2, D2, L2 = 6, 100, 20
    pred2 = jax.random.normal(k1, (B2, D2), jnp.float32)
    true2_bce = (jax.random.uniform(k2, (B2, D2)) > 0.5).astype(jnp.float32)
    true2_multi = jax.nn.softmax(jax.random.normal(k5, (B2, D2), jnp.float32), axis=-1)
    mean2 = jax.random.normal(k3, (B2, L2), jnp.float32)
    logvar2 = 0.1 * jax.random.normal(k4, (B2, L2), jnp.float32)

    check("bce_ragged", vae_loss(pred2, true2_bce, mean2, logvar2, beta=0.5, multi=False),
          _reference(pred2, true2_bce, mean2, logvar2, 0.5, False), 1e-5)
    check("multi_ragged", vae_loss(pred2, true2_multi, mean2, logvar2, beta=1.0, multi=True),
          _reference(pred2, true2_multi, mean2, logvar2, 1.0, True), 1e-5)

    # --- larger feature dim: multiple feature tiles (online logsumexp path) ---
    B3, D3, L3 = 16, 2560, 8
    pred3 = jax.random.normal(k1, (B3, D3), jnp.float32)
    true3_bce = (jax.random.uniform(k2, (B3, D3)) > 0.5).astype(jnp.float32)
    true3_multi = jax.nn.softmax(jax.random.normal(k5, (B3, D3), jnp.float32), axis=-1)
    mean3 = jax.random.normal(k3, (B3, L3), jnp.float32)
    logvar3 = 0.1 * jax.random.normal(k4, (B3, L3), jnp.float32)

    check("bce_multitile", vae_loss(pred3, true3_bce, mean3, logvar3, beta=0.7, multi=False),
          _reference(pred3, true3_bce, mean3, logvar3, 0.7, False), 1e-4)
    check("multi_online_lse", vae_loss(pred3, true3_multi, mean3, logvar3, beta=0.3, multi=True),
          _reference(pred3, true3_multi, mean3, logvar3, 0.3, True), 1e-4)

    # --- bf16 inputs: kernel upcasts per tile; halves HBM traffic for pred/true ---
    pred_bf = pred.astype(jnp.bfloat16)
    true_bf = true_bce.astype(jnp.bfloat16)
    check("bce_bf16", vae_loss(pred_bf, true_bf, mean, logvar, beta=1.0, multi=False),
          _reference(pred_bf, true_bf, mean, logvar, 1.0, False), 1e-4)

    print("KERNEL_OK")
</pallas_src>

<mosaic_0001>
module attributes {stable_mosaic.version = 11 : i64} {
  func.func @_bce_kernel(%arg0: i32, %arg1: i32, %arg2: memref<1xf32, #tpu.memory_space<smem>>, %arg3: memref<8x128xf32, #tpu.memory_space<vmem>>, %arg4: memref<8x128xf32, #tpu.memory_space<vmem>>, %arg5: memref<8x32xf32, #tpu.memory_space<vmem>>, %arg6: memref<8x32xf32, #tpu.memory_space<vmem>>, %arg7: memref<1x8x128xf32, #tpu.memory_space<vmem>>, %arg8: memref<8x128xf32, #tpu.memory_space<vmem>>) attributes {dimension_semantics = [#tpu.dimension_semantics<parallel>, #tpu.dimension_semantics<arbitrary>], iteration_bounds = array<i64: 1, 1>, scalar_prefetch = 0 : i64, scratch_operands = 1 : i64, tpu.core_type = #tpu.core_type<tc>, window_params = [{transform_indices = @transform_0, window_bounds = array<i64: 1>}, {transform_indices = @transform_1, window_bounds = array<i64: 8, 128>}, {transform_indices = @transform_2, window_bounds = array<i64: 8, 128>}, {transform_indices = @transform_3, window_bounds = array<i64: 8, 32>}, {transform_indices = @transform_4, window_bounds = array<i64: 8, 32>}, {transform_indices = @transform_5, window_bounds = array<i64: 1, 8, 128>}]} {
    %c0_i32 = arith.constant 0 : i32
    %0 = arith.cmpi eq, %arg1, %c0_i32 : i32
    %1 = arith.extui %0 : i1 to i32
    %c0_i32_0 = arith.constant 0 : i32
    %2 = arith.cmpi ne, %1, %c0_i32_0 : i32
    scf.if %2 {
      %cst_12 = arith.constant 0.000000e+00 : f32
      %23 = vector.broadcast %cst_12 : f32 to vector<8x128xf32>
      %c0_13 = arith.constant 0 : index
      %c0_14 = arith.constant 0 : index
      %24 = vector.load %arg8[%c0_13, %c0_14] : memref<8x128xf32, #tpu.memory_space<vmem>>, vector<8x128xf32>
      tpu.vector_store %arg8[%c0_13, %c0_14], %23 {strides = array<i32>} : memref<8x128xf32, #tpu.memory_space<vmem>>, vector<8x128xf32>,
    } else {
    }
    %c0 = arith.constant 0 : index
    %c0_1 = arith.constant 0 : index
    %3 = vector.load %arg3[%c0, %c0_1] : memref<8x128xf32, #tpu.memory_space<vmem>>, vector<8x128xf32>
    %c0_2 = arith.constant 0 : index
    %c0_3 = arith.constant 0 : index
    %4 = vector.load %arg4[%c0_2, %c0_3] : memref<8x128xf32, #tpu.memory_space<vmem>>, vector<8x128xf32>
    %cst = arith.constant 0.000000e+00 : f32
    %5 = vector.broadcast %cst : f32 to vector<8x128xf32>
    %6 = arith.maximumf %3, %5 : vector<8x128xf32>
    %7 = arith.mulf %3, %4 : vector<8x128xf32>
    %8 = arith.subf %6, %7 : vector<8x128xf32>
    %9 = math.absf %3 : vector<8x128xf32>
    %cst_4 = arith.constant 0.000000e+00 : f32
    %10 = vector.broadcast %cst_4 : f32 to vector<8x128xf32>
    %11 = arith.subf %10, %9 : vector<8x128xf32>
    %12 = math.exp %11 : vector<8x128xf32>
    %13 = math.log1p %12 : vector<8x128xf32>
    %14 = arith.addf %8, %13 : vector<8x128xf32>
    %c0_5 = arith.constant 0 : index
    %c0_6 = arith.constant 0 : index
    %15 = vector.load %arg8[%c0_5, %c0_6] : memref<8x128xf32, #tpu.memory_space<vmem>>, vector<8x128xf32>
    %16 = vector.shape_cast %14 : vector<8x128xf32> to vector<1x8x128xf32>
    %cst_7 = arith.constant dense<0.000000e+00> : vector<8x128xf32>
    %17 = vector.multi_reduction <add>, %16, %cst_7 [0] : vector<1x8x128xf32> to vector<8x128xf32>
    %18 = arith.addf %15, %17 : vector<8x128xf32>
    %c0_8 = arith.constant 0 : index
    %c0_9 = arith.constant 0 : index
    %19 = vector.load %arg8[%c0_8, %c0_9] : memref<8x128xf32, #tpu.memory_space<vmem>>, vector<8x128xf32>
    tpu.vector_store %arg8[%c0_8, %c0_9], %18 {strides = array<i32>} : memref<8x128xf32, #tpu.memory_space<vmem>>, vector<8x128xf32>,
    %c0_i32_10 = arith.constant 0 : i32
    %20 = arith.cmpi eq, %arg1, %c0_i32_10 : i32
    %21 = arith.extui %20 : i1 to i32
    %c0_i32_11 = arith.constant 0 : i32
    %22 = arith.cmpi ne, %21, %c0_i32_11 : i32
    scf.if %22 {
      %c0_12 = arith.constant 0 : index
      %c0_13 = arith.constant 0 : index
      %23 = vector.load %arg8[%c0_12, %c0_13] : memref<8x128xf32, #tpu.memory_space<vmem>>, vector<8x128xf32>
      %24 = vector.shape_cast %23 : vector<8x128xf32> to vector<1x8x128xf32>
      %cst_14 = arith.constant dense<0.000000e+00> : vector<1xf32>
      %25 = vector.multi_reduction <add>, %24, %cst_14 [1, 2] : vector<1x8x128xf32> to vector<1xf32>
      %26 = vector.shape_cast %25 : vector<1xf32> to vector<1x1x1xf32>
      %27 = vector.extract %26[0, 0, 0] : f32 from vector<1x1x1xf32>
      %cst_15 = arith.constant 9.765625E-4 : f32
      %28 = arith.mulf %27, %cst_15 : f32
      %c0_16 = arith.constant 0 : index
      %c0_17 = arith.constant 0 : index
      %29 = vector.load %arg5[%c0_16, %c0_17] : memref<8x32xf32, #tpu.memory_space<vmem>>, vector<8x32xf32>
      %c0_18 = arith.constant 0 : index
      %c0_19 = arith.constant 0 : index
      %30 = vector.load %arg6[%c0_18, %c0_19] : memref<8x32xf32, #tpu.memory_space<vmem>>, vector<8x32xf32>
      %cst_20 = arith.constant 1.000000e+00 : f32
      %31 = vector.broadcast %cst_20 : f32 to vector<8x32xf32>
      %32 = arith.addf %31, %30 : vector<8x32xf32>
      %33 = arith.mulf %29, %29 : vector<8x32xf32>
      %34 = arith.subf %32, %33 : vector<8x32xf32>
      %35 = math.exp %30 : vector<8x32xf32>
      %36 = arith.subf %34, %35 : vector<8x32xf32>
      %c0_21 = arith.constant 0 : index
      %37 = memref.load %arg2[%c0_21] : memref<1xf32, #tpu.memory_space<smem>>
      %38 = vector.shape_cast %36 : vector<8x32xf32> to vector<1x8x32xf32>
      %cst_22 = arith.constant dense<0.000000e+00> : vector<1xf32>
      %39 = vector.multi_reduction <add>, %38, %cst_22 [1, 2] : vector<1x8x32xf32> to vector<1xf32>
      %40 = vector.shape_cast %39 : vector<1xf32> to vector<1x1x1xf32>
      %41 = vector.extract %40[0, 0, 0] : f32 from vector<1x1x1xf32>
      %cst_23 = arith.constant -6.250000e-02 : f32
      %42 = arith.mulf %cst_23, %41 : f32
      %43 = arith.mulf %37, %42 : f32
      %44 = arith.addf %28, %43 : f32
      %45 = tpu.iota {dimensions = array<i32: 1>} : vector<1x8x128xi32>
      %46 = tpu.iota {dimensions = array<i32: 2>} : vector<1x8x128xi32>
      %c0_i32_24 = arith.constant 0 : i32
      %47 = vector.broadcast %c0_i32_24 : i32 to vector<1x8x128xi32>
      %48 = arith.cmpi eq, %45, %47 : vector<1x8x128xi32>
      %c0_i32_25 = arith.constant 0 : i32
      %49 = vector.broadcast %c0_i32_25 : i32 to vector<1x8x128xi32>
      %50 = arith.cmpi eq, %46, %49 : vector<1x8x128xi32>
      %51 = arith.andi %48, %50 : vector<1x8x128xi1>
      %cst_26 = arith.constant 0.000000e+00 : f32
      %52 = vector.broadcast %44 : f32 to vector<1x8x128xf32>
      %53 = vector.broadcast %cst_26 : f32 to vector<1x8x128xf32>
      %54 = arith.select %51, %52, %53 : vector<1x8x128xi1>, vector<1x8x128xf32>
      %c0_27 = arith.constant 0 : index
      %c0_28 = arith.constant 0 : index
      %c0_29 = arith.constant 0 : index
      %55 = vector.load %arg7[%c0_27, %c0_28, %c0_29] : memref<1x8x128xf32, #tpu.memory_space<vmem>>, vector<1x8x128xf32>
      tpu.vector_store %arg7[%c0_27, %c0_28, %c0_29], %54 {strides = array<i32>} : memref<1x8x128xf32, #tpu.memory_space<vmem>>, vector<1x8x128xf32>,
    } else {
    }
    return
  }
  func.func @transform_0(%arg0: i32, %arg1: i32) -> i32 {
    %c0_i32 = arith.constant 0 : i32
    %c0_i32_0 = arith.constant 0 : i32
    return %c0_i32 : i32
  }
  func.func @transform_1(%arg0: i32, %arg1: i32) -> (i32, i32) {
    %c0_i32 = arith.constant 0 : i32
    return %arg0, %arg1 : i32, i32
  }
  func.func @transform_2(%arg0: i32, %arg1: i32) -> (i32, i32) {
    %c0_i32 = arith.constant 0 : i32
    return %arg0, %arg1 : i32, i32
  }
  func.func @transform_3(%arg0: i32, %arg1: i32) -> (i32, i32) {
    %c0_i32 = arith.constant 0 : i32
    %c0_i32_0 = arith.constant 0 : i32
    return %arg0, %c0_i32 : i32, i32
  }
  func.func @transform_4(%arg0: i32, %arg1: i32) -> (i32, i32) {
    %c0_i32 = arith.constant 0 : i32
    %c0_i32_0 = arith.constant 0 : i32
    return %arg0, %c0_i32 : i32, i32
  }
  func.func @transform_5(%arg0: i32, %arg1: i32) -> (i32, i32, i32) {
    %c0_i32 = arith.constant 0 : i32
    %c0_i32_0 = arith.constant 0 : i32
    %c0_i32_1 = arith.constant 0 : i32
    return %arg0, %c0_i32, %c0_i32_0 : i32, i32, i32
  }
}

</mosaic_0001>

<bundles_post_ra>
// kernel: vae_loss.1
= control target key start
LH: loop header
LB: loop body
LE: loop exit
PB: predicated region body
PF: predicated region fallthrough
CT: control target
= control target key end

     0   :  { %11 = vsyncpa [#allocation5], 0  ;;  %s392_s0 = inlined_call_operand.<no memory space> [shape: f32[1], index: 0, kind: input, shape index: {}]   ;;  %s393_s1 = inlined_call_operand.hbm [shape: f32[8,128], index: 1, kind: input, shape index: {}]   ;;  %s394_s2 = inlined_call_operand.hbm [shape: f32[8,128], index: 2, kind: input, shape index: {}]   ;;  %s395_s3 = inlined_call_operand.hbm [shape: f32[8,32], index: 3, kind: input, shape index: {}]   ;;  %s396_s4 = inlined_call_operand.hbm [shape: f32[8,32], index: 4, kind: input, shape index: {}]   ;;  %s397_s5 = inlined_call_operand.hbm [shape: f32[1,8,128], index: 5, kind: output, shape index: {}]  }
   0x1   :  { %12 = vsyncpa [#allocation8], 0 }
   0x2   :  { %13 = vsyncpa [#allocation11], 0 }
   0x3   :  { %14 = vsyncpa [#allocation6], 0  ;;  %s294_s18 = smov [#allocation7]   ;;  %s295_s20 = smov [#allocation4]  }
   0x4   :  { %s33_s19 = sshll.u32 %s294_s18, 4  ;;  %s23_s21 = sshll.u32 %s295_s20, 4  ;;  %s34_s19 = int_to_ptr.vmem [resolvable:$true] %s33_s19  ;;  %s24_s21 = int_to_ptr.vmem [resolvable:$true] %s23_s21 }
   0x5   :  { %s176_s24 = scalar_lea.hbm %s394_s2, 128 }
   0x6   :  { %p177_p0 = scmp.ne.s32.totalorder %s394_s2, %s176_s24  ;;  %p180_p1 = scmp.lt.u32.totalorder %s176_s24, %s394_s2 }
   0x8   :  { %p182_p2 = pnand %p180_p1, %p177_p0 }
   0xa   :  { %185 = shalt.err (!%p182_p2)
}
   0xb   :  { %s186_s29 = scalar_lea.vmem %s34_s19, 128  ;;  %p191_p4 = scmp.lt.s32.totalorder %s34_s19, %s34_s19 }
   0xc   :  { %p187_p3 = scmp.ne.s32.totalorder %s34_s19, %s186_s29  ;;  %p192_p5 = scmp.lt.s32.totalorder %s186_s29, %s186_s29 }
   0xe   :  { %p193_p6 = por %p192_p5, %p191_p4 }
  0x10   :  { %p194_p7 = pnand %p193_p6, %p187_p3 }
  0x12   :  { %197 = shalt.err (!%p194_p7)
}
  0x13   :  { %36 = dma.hbm_to_vmem [thread:$0]  %s394_s2, 128, %s34_s19, [#allocation8]  }
  0x14   :  { %s198_s9 = scalar_lea.hbm %s393_s1, 128 }
  0x15   :  { %p199_p8 = scmp.ne.s32.totalorder %s393_s1, %s198_s9  ;;  %p202_p9 = scmp.lt.u32.totalorder %s198_s9, %s393_s1 }
  0x17   :  { %p204_p10 = pnand %p202_p9, %p199_p8 }
  0x19   :  { %207 = shalt.err (!%p204_p10)
}
  0x1a   :  { %s208_s14 = scalar_lea.vmem %s24_s21, 128  ;;  %p213_p12 = scmp.lt.s32.totalorder %s24_s21, %s24_s21 }
  0x1b   :  { %p209_p11 = scmp.ne.s32.totalorder %s24_s21, %s208_s14  ;;  %p214_p13 = scmp.lt.s32.totalorder %s208_s14, %s208_s14 }
  0x1d   :  { %p215_p0 = por %p214_p13, %p213_p12 }
  0x1f   :  { %p216_p1 = pnand %p215_p0, %p209_p11 }
  0x21   :  { %219 = shalt.err (!%p216_p1)
}
  0x22   :  { %26 = dma.hbm_to_vmem [thread:$0]  %s393_s1, 128, %s24_s21, [#allocation5]  }
  0x23   :  { %s296_s16 = smov [#allocation9]   ;;  %s297_s18 = smov [#allocation10]  }
  0x24   :  { %s43_s17 = sshll.u32 %s296_s16, 4  ;;  %s53_s19 = sshll.u32 %s297_s18, 4  ;;  %s44_s17 = int_to_ptr.vmem [resolvable:$true] %s43_s17  ;;  %s54_s19 = int_to_ptr.vmem [resolvable:$true] %s53_s19 }
  0x25   :  { %s220_s23 = scalar_lea.hbm %s395_s3, 128 }
  0x26   :  { %p221_p2 = scmp.ne.s32.totalorder %s395_s3, %s220_s23  ;;  %p224_p3 = scmp.lt.u32.totalorder %s220_s23, %s395_s3 }
  0x28   :  { %p226_p4 = pnand %p224_p3, %p221_p2 }
  0x2a   :  { %229 = shalt.err (!%p226_p4)
}
  0x2b   :  { %s230_s1 = scalar_lea.vmem %s44_s17, 128  ;;  %p235_p6 = scmp.lt.s32.totalorder %s44_s17, %s44_s17 }
  0x2c   :  { %p231_p5 = scmp.ne.s32.totalorder %s44_s17, %s230_s1  ;;  %p236_p7 = scmp.lt.s32.totalorder %s230_s1, %s230_s1 }
  0x2e   :  { %p237_p8 = por %p236_p7, %p235_p6 }
  0x30   :  { %p238_p9 = pnand %p237_p8, %p231_p5 }
  0x32   :  { %241 = shalt.err (!%p238_p9)
}
  0x33   :  { %46 = dma.hbm_to_vmem [thread:$0]  %s395_s3, 128, %s44_s17, [#allocation8]  }
  0x34   :  { %s242_s6 = scalar_lea.hbm %s396_s4, 128 }
  0x35   :  { %p243_p10 = scmp.ne.s32.totalorder %s396_s4, %s242_s6  ;;  %p246_p11 = scmp.lt.u32.totalorder %s242_s6, %s396_s4 }
  0x37   :  { %p248_p12 = pnand %p246_p11, %p243_p10 }
  0x39   :  { %251 = shalt.err (!%p248_p12)
}
  0x3a   :  { %s252_s11 = scalar_lea.vmem %s54_s19, 128  ;;  %p257_p0 = scmp.lt.s32.totalorder %s54_s19, %s54_s19 }
  0x3b   :  { %p253_p13 = scmp.ne.s32.totalorder %s54_s19, %s252_s11  ;;  %p258_p1 = scmp.lt.s32.totalorder %s252_s11, %s252_s11 }
  0x3d   :  { %p259_p2 = por %p258_p1, %p257_p0 }
  0x3f   :  { %p260_p3 = pnand %p259_p2, %p253_p13 }
  0x41   :  { %263 = shalt.err (!%p260_p3)
}
  0x42   :  { %56 = dma.hbm_to_vmem [thread:$0]  %s396_s4, 128, %s54_s19, [#allocation11]  }
  0x43   :  { %286 = dma.done.wait [#allocation5], 128  }
  0x44   :  { %287 = vsyncadd [#allocation5], 4294967168 }
  0x45   :  { %288 = dma.done.wait [#allocation8], 256  }
  0x46   :  { %289 = vsyncadd [#allocation8], 4294967040 }
  0x47   :  { %290 = dma.done.wait [#allocation11], 128  }
  0x48   :  { %291 = vsyncadd [#allocation11], 4294967168  ;;  %v74_v0 = vld [vmem:[#allocation4] sm:$0xff]  ;;  %v112_v4 = vld [vmem:[#allocation10] sm:$0xff]  ;;  %vm120_vm1 = vcmask 261120   ;;  %v134_v41 = vlaneseq  ;;  %s298_s18 = smov [#allocation12]  }
  0x49   :  { %v79_v1 = vand.u32 2147483647, %v74_v0  ;;  %v116_v5 = vmul.f32 1.442695, %v112_v4  ;;  %v111_v9 = vld [vmem:[#allocation9] sm:$0xff]  ;;  %v75_v10 = vld [vmem:[#allocation7] sm:$0xff] }
  0x4a   :  { %v113_v12 = vadd.f32 1.0, %v112_v4  ;;  %v114_v13 = vmul.f32 %v111_v9, %v111_v9  ;;  %v76_v14 = vmax.f32 %v74_v0, 0.0  ;;  %v77_v15 = vmul.f32 %v75_v10, %v74_v0  ;;  %s150_s19 = sshll.u32 %s298_s18, 4  ;;  %s151_s19 = int_to_ptr.vmem [resolvable:$true] %s150_s19 }
  0x4b   :  { %v80_v2 = vsub.f32 0.0, %v79_v1  ;;  %v135_v42 = vshrl.u32 %v134_v41, 7  ;;  %v137_v43 = vand.u32 127, %v134_v41  ;;  %s264_s22 = scalar_lea.vmem %s151_s19, 128  ;;  %p269_p5 = scmp.lt.s32.totalorder %s151_s19, %s151_s19 }
  0x4c   :  { %v115_v19 = vsub.f32 %v113_v12, %v114_v13  ;;  %v78_v21 = vsub.f32 %v76_v14, %v77_v15  ;;  %p265_p4 = scmp.ne.s32.totalorder %s151_s19, %s264_s22  ;;  %p270_p6 = scmp.lt.s32.totalorder %s264_s22, %s264_s22 }
  0x4d   :  { %v81_v3 = vmul.f32 1.442695, %v80_v2  ;;  %vm138_vm2 = vcmp.eq.s32.totalorder %v135_v42, 0  ;;  %vm139_vm3 = vcmp.eq.s32.totalorder %v137_v43, 0 }
  0x4e   :  { %vm140_vm4 = vmand %vm138_vm2, %vm139_vm3  ;;  %p271_p7 = por %p270_p6, %p269_p5 }
  0x4f   :  { %170 = vpow2.f32 %v81_v3 }
  0x50   :  { %172 = vpow2.f32 %v116_v5  ;;  %p272_p8 = pnand %p271_p7, %p265_p4 }
  0x59   :  { %v171_v6 = vpop.eup %170 }
  0x5a   :  { %v83_v7 = vadd.f32 1.0, %v171_v6  ;;  %v86_v8 = vmul.f32 -0.5, %v171_v6  ;;  %v89_v16 = vand.u32 2147483647, %v171_v6  ;;  %v173_v17 = vpop.eup %172 }
  0x5b   :  { %v118_v24 = vsub.f32 %v115_v19, %v173_v17 }
  0x5c   :  { %174 = vlog2.f32 %v83_v7  ;;  %v87_v11 = vadd.f32 1.0, %v86_v8  ;;  %vm90_vm0 = vcmp.lt.f32.partialorder %v89_v16, 0.0004427343 }
  0x5d   :  { %v121_v26 = vsel %vm120_vm1, %v118_v24, 0.0 }
  0x5e   :  { %v88_v18 = vmul.f32 %v171_v6, %v87_v11 }
  0x66   :  { %v175_v20 = vpop.eup %174 }
  0x67   :  { %v85_v22 = vmul.f32 0.6931472, %v175_v20 }
  0x69   :  { %v91_v23 = vsel %vm90_vm0, %v88_v18, %v85_v22 }
  0x6a   :  { %v92_v25 = vadd.f32 %v91_v23, %v78_v21 }
  0x6c   :  { %101 = vadd.xlane.f32.xlu0 %v92_v25 }
  0x70   :  { %122 = vadd.xlane.f32.xlu0 %v121_v26 }
  0xf9   :  { %v102_v27 = vpop.xlane.xlu0 %101 }
  0xfa   :  { %v103_v28 = vrot.slane %v102_v27, 4 }
  0xfc   :  { %v104_v29 = vadd.f32 %v103_v28, %v102_v27 }
  0xfd   :  { %v123_v30 = vpop.xlane.xlu0 %122 }
  0xfe   :  { %v105_v31 = vrot.slane %v104_v29, 2  ;;  %v124_v32 = vrot.slane %v123_v30, 4 }
 0x100   :  { %v125_v33 = vadd.f32 %v124_v32, %v123_v30  ;;  %v106_v34 = vadd.f32 %v105_v31, %v104_v29 }
 0x102   :  { %v126_v35 = vrot.slane %v125_v33, 2  ;;  %v107_v36 = vrot.slane %v106_v34, 1 }
 0x104   :  { %v127_v37 = vadd.f32 %v126_v35, %v125_v33  ;;  %v108_v38 = vadd.f32 %v107_v36, %v106_v34 }
 0x106   :  { %161 = vpush %v108_v38  ;;  %v128_v39 = vrot.slane %v127_v37, 1 }
 0x108   :  { %v129_v40 = vadd.f32 %v128_v39, %v127_v37 }
 0x10a   :  { %163 = vpush %v129_v40 }
 0x137   :  { %s162_s4 = spop %161 }
 0x138   :  { %s110_s2 = smul.f32 0.0009765625, %s162_s4 }
 0x13b   :  { %s164_s13 = spop %163 }
 0x13c   :  { %s131_s14 = smul.f32 -0.0625, %s164_s13 }
 0x13e   :  { %s132_s17 = smul.f32 %s131_s14, %s392_s0 }
 0x140   :  { %s133_s20 = sadd.f32 %s132_s17, %s110_s2 }
 0x142   :  { %v141_v44 = vstv %s133_s20 }
 0x143   :  { %v142_v45 = vsel %vm140_vm4, %v141_v44, 0.0 }
 0x144   :  { %143 = vst [vmem:[#allocation12] sm:$0xff] %v142_v45 }
 0x145   :  { %275 = shalt.err (!%p272_p8)
}
 0x146   :  { %s276_s25 = scalar_lea.hbm %s397_s5, 128 }
 0x147   :  { %p277_p9 = scmp.ne.s32.totalorder %s397_s5, %s276_s25  ;;  %p280_p10 = scmp.lt.u32.totalorder %s276_s25, %s397_s5 }
 0x149   :  { %p282_p11 = pnand %p280_p10, %p277_p9 }
 0x14b   :  { %285 = shalt.err (!%p282_p11)
}
 0x14c   :  { %153 = dma.vmem_to_hbm [thread:$0]  %s151_s19, 128, %s397_s5, [#allocation6]  }
 0x14d   :  { %292 = dma.done.wait [#allocation6], 128  }
 0x14e   :  { %293 = vsyncadd [#allocation6], 4294967168 }
 0x14f   :  { %157 = vsyncpa [#allocation5], 1 }
 0x150   :  { %158 = vsyncpa [#allocation8], 1 }
 0x151   :  { %159 = vsyncpa [#allocation11], 1 }
 0x152   :  { %160 = vsyncpa [#allocation6], 1 }

</bundles_post_ra>
